<compile_context>
chip_gen: v5e
topology: v5e:2x2
jax: 0.10.0
libtpu: 0.0.40
codegen_flags: <defaults>
</compile_context>

<pallas_src>
import functools

import jax
import jax.numpy as jnp
from jax.experimental import pallas as pl
from jax.experimental.pallas import tpu as pltpu


def _align128(x):
    return ((x + 127) // 128) * 128


def _gat_fused_kernel(feat_ref, adj_ref, *refs, heads, out_dim, neg_slope):
    """One graph per grid step; all GATConv layers fused in-VMEM.

    refs = [w_big_0, bias_0, w_big_1, bias_1, ..., out_ref]
    """
    param_refs = refs[:-1]
    out_ref = refs[-1]

    # ---- adjacency -> additive mask bias, built once per graph -----------------
    adjf = adj_ref[...].astype(jnp.float32)               # (N_dst, N_src), {0,1}
    neg = (adjf - 1.0) * jnp.float32(1e30)                 # 0 on edges, -1e30 off
    # zero-in-degree guard (allow_zero_in_degree=True -> bias-only rows), hoisted
    edge_scale = (jnp.sum(adjf, axis=1, keepdims=True) > 0.0).astype(jnp.float32)

    h = feat_ref[...]                                      # (N, F_in) float32
    num_layers = len(heads)

    for l in range(num_layers):                            # static unroll over layers
        n_heads = heads[l]
        hd = n_heads * out_dim
        z_pad = _align128(hd)                              # el/er start on a vreg boundary
        w_big = param_refs[2 * l][...]                     # (F_in, z_pad + 128) bf16
        bias = param_refs[2 * l + 1][...]                  # (1, hd) f32

        # One wide bf16 MXU matmul yields the projection z AND both attention logits.
        zee = jnp.dot(h.astype(jnp.bfloat16), w_big,
                      preferred_element_type=jnp.float32)  # (N, z_pad+128) f32
        z_bf = zee[:, :hd].astype(jnp.bfloat16)            # (N, H*D) aggregation operand
        el_t = zee[:, z_pad:z_pad + n_heads].T             # (H, N) source side (aligned)
        er = zee[:, z_pad + n_heads:z_pad + 2 * n_heads]   # (N, H) dest side

        outs = []
        for hh in range(n_heads):                          # static unroll, H is small
            # e[d, s] = leaky_relu(er[d] + el[s]); additive -1e30 mask off-edges.
            s = er[:, hh:hh + 1] + el_t[hh:hh + 1, :]      # (N_dst, N_src) f32
            s = jnp.maximum(s, neg_slope * s) + neg        # leaky_relu (2 ops) + mask
            m = jnp.max(s, axis=1, keepdims=True)
            p = jnp.exp(s - m)                             # masked entries underflow to 0
            denom = jnp.sum(p, axis=1, keepdims=True)
            # Deferred softmax normalization: aggregate first (bf16 MXU), scale after.
            o = jnp.dot(p.astype(jnp.bfloat16),
                        z_bf[:, hh * out_dim:(hh + 1) * out_dim],
                        preferred_element_type=jnp.float32)   # (N, D) f32
            inv = pl.reciprocal(denom, approx=True) * edge_scale
            outs.append(o * inv)

        out = (outs[0] if n_heads == 1 else jnp.concatenate(outs, axis=1)) + bias
        if l < num_layers - 1:                             # hidden layers: ELU; flatten(1)==concat
            out = jnp.where(out > 0, out, jnp.exp(jnp.minimum(out, 0.0)) - 1.0)
        h = out

    # Lane-dense store: pad the (N, H_last*D) result up to the 128-lane output slab.
    n, width = h.shape
    pad = out_ref.shape[1] - width
    if pad > 0:
        h = jnp.concatenate([h, jnp.zeros((n, pad), jnp.float32)], axis=1)
    out_ref[...] = h


def _block_diag_attn(a):
    """(H, D) attention vector -> (H*D, H) block-diagonal matrix (host side)."""
    h_num, d = a.shape
    m = jnp.zeros((h_num * d, h_num), jnp.float32)
    for h in range(h_num):
        m = m.at[h * d:(h + 1) * d, h].set(a[h])
    return m


def _build_w_big(w, attn_l, attn_r, out_dim):
    """Fold attn vectors into the projection with a 128-lane-aligned column layout:
    [ z (H*D) | zero pad -> 128k | el (H), er (H) | zero pad -> +128 ], shipped bf16."""
    h_num = attn_l.shape[0]
    hd = h_num * out_dim
    z_pad = _align128(hd)
    f_in = w.shape[0]
    w_el = w @ _block_diag_attn(attn_l)                    # (F_in, H)
    w_er = w @ _block_diag_attn(attn_r)                    # (F_in, H)
    w_big = jnp.zeros((f_in, z_pad + 128), jnp.float32)
    w_big = w_big.at[:, :hd].set(w)
    w_big = w_big.at[:, z_pad:z_pad + h_num].set(w_el)
    w_big = w_big.at[:, z_pad + h_num:z_pad + 2 * h_num].set(w_er)
    return w_big.astype(jnp.bfloat16)


def gat_forward(feat, adj, layer_params, heads, hidden_dim, neg_slope):
    """Mirrors GAT.forward for a batch of G same-size graphs, fused in one pallas_call.

    feat: (G, N, F_in) float32;  adj: (G, N_dst, N_src) int8.
    Returns (G, N, heads[-1]*hidden_dim) float32.
    """
    g_cnt, n, f_in = feat.shape
    assert adj.shape == (g_cnt, n, n)

    w_inputs = []
    in_specs = [
        pl.BlockSpec((None, n, f_in), lambda g: (g, 0, 0)),     # per-graph feat (pipelined)
        pl.BlockSpec((None, n, n), lambda g: (g, 0, 0)),        # per-graph int8 adjacency
    ]
    total_in_bytes = feat.size * 4 + adj.size * 1
    flops = 0
    transc = 0
    for (w, attn_l, attn_r, bias), h_num in zip(layer_params, heads):
        w_big = _build_w_big(w, attn_l, attn_r, hidden_dim)
        b = bias.reshape(1, h_num * hidden_dim).astype(jnp.float32)
        w_inputs += [w_big, b]
        # Constant index maps: weights DMA'd once, stay VMEM-resident across the grid.
        in_specs += [
            pl.BlockSpec(w_big.shape, lambda g: (0, 0)),
            pl.BlockSpec(b.shape, lambda g: (0, 0)),
        ]
        total_in_bytes += w_big.size * 2 + b.size * 4
        flops += 2 * n * w_big.shape[0] * w_big.shape[1]                 # projection
        flops += h_num * (2 * n * n * hidden_dim + 6 * n * n)            # aggregation + softmax
        transc += h_num * n * n                                          # exp

    out_width = heads[-1] * hidden_dim
    out_pad = max(128, _align128(out_width))               # lane-dense output slab
    out_bytes = g_cnt * n * out_pad * 4

    kernel = functools.partial(
        _gat_fused_kernel, heads=tuple(heads), out_dim=hidden_dim, neg_slope=neg_slope)

    out_padded = pl.pallas_call(
        kernel,
        out_shape=jax.ShapeDtypeStruct((g_cnt, n, out_pad), jnp.float32),
        grid=(g_cnt,),
        in_specs=in_specs,
        out_specs=pl.BlockSpec((None, n, out_pad), lambda g: (g, 0, 0)),
        compiler_params=pltpu.CompilerParams(
            dimension_semantics=("parallel",),             # shards graphs across TCs on v7x
            vmem_limit_bytes=32 * 1024 * 1024),
        cost_estimate=pl.CostEstimate(
            flops=g_cnt * flops,
            transcendentals=g_cnt * transc,
            bytes_accessed=total_in_bytes + out_bytes),
    )(feat, adj, *w_inputs)

    # last layer has 1 head -> .mean(1) is the identity on (N, 1, D)
    # TODO(synk): dgl.unbatch (rebuilding per-graph DGL objects) has no Pallas
    # equivalent; we return the per-graph node-feature tensor instead.
    # TODO(synk): for N >> 128 switch to a dst-row-tiled per-layer kernel with an
    # online softmax instead of this whole-graph VMEM-resident kernel.
    return out_padded[:, :, :out_width]


def init_gat_conv(key, in_dim, out_dim, num_heads):
    k1, k2, k3 = jax.random.split(key, 3)
    gain = jnp.sqrt(2.0)
    w = (jax.random.normal(k1, (in_dim, num_heads * out_dim), jnp.float32)
         * gain / jnp.sqrt(jnp.float32(in_dim)))
    attn_l = jax.random.normal(k2, (num_heads, out_dim), jnp.float32) * 0.1
    attn_r = jax.random.normal(k3, (num_heads, out_dim), jnp.float32) * 0.1
    bias = jnp.zeros((num_heads, out_dim), jnp.float32)
    return (w, attn_l, attn_r, bias)


if __name__ == "__main__":
    # args: embedding_dim=16, g_hidden_dim=32, g_num_heads=2, g_num_layers=2,
    #       g_negative_slope=0.2, g_residual=False, g_activation=ELU, eval mode.
    G = 8            # batch of graphs (grid axis)
    N = 16           # nodes per graph
    EMBED_DIM = 16
    HIDDEN = 32
    NUM_HEADS = 2
    NUM_LAYERS = 2
    NEG_SLOPE = 0.2
    heads = [NUM_HEADS] * NUM_LAYERS + [1]

    key = jax.random.PRNGKey(0)
    k_feat, k_adj, k_p = jax.random.split(key, 3)

    feat = jax.random.normal(k_feat, (G, N, EMBED_DIM), jnp.float32)
    # dense int8 adjacency mask adj[g, dst, src]; allow_zero_in_degree=True.
    adj = jax.random.bernoulli(k_adj, 0.3, (G, N, N)).astype(jnp.int8)

    layer_keys = jax.random.split(k_p, NUM_LAYERS + 1)
    layer_params = []
    in_dim = EMBED_DIM
    for l in range(NUM_LAYERS):
        layer_params.append(init_gat_conv(layer_keys[l], in_dim, HIDDEN, heads[l]))
        in_dim = HIDDEN * heads[l]
    layer_params.append(init_gat_conv(layer_keys[-1], in_dim, HIDDEN, heads[-1]))

    out = gat_forward(feat, adj, layer_params, heads, HIDDEN, NEG_SLOPE)
    out = jax.block_until_ready(out)
    assert out.shape == (G, N, HIDDEN)
    assert bool(jnp.all(jnp.isfinite(out)))
    print("KERNEL_OK")
</pallas_src>

<mosaic_0001>
module attributes {stable_mosaic.version = 11 : i64} {
  func.func @_gat_fused_kernel(%arg0: i32, %arg1: memref<1x16x16xf32, #tpu.memory_space<vmem>>, %arg2: memref<1x16x16xi8, #tpu.memory_space<vmem>>, %arg3: memref<16x256xbf16, #tpu.memory_space<vmem>>, %arg4: memref<1x64xf32, #tpu.memory_space<vmem>>, %arg5: memref<64x256xbf16, #tpu.memory_space<vmem>>, %arg6: memref<1x64xf32, #tpu.memory_space<vmem>>, %arg7: memref<64x256xbf16, #tpu.memory_space<vmem>>, %arg8: memref<1x32xf32, #tpu.memory_space<vmem>>, %arg9: memref<1x16x128xf32, #tpu.memory_space<vmem>>) attributes {dimension_semantics = [#tpu.dimension_semantics<parallel>], iteration_bounds = array<i64: 8>, scalar_prefetch = 0 : i64, scratch_operands = 0 : i64, tpu.core_type = #tpu.core_type<tc>, window_params = [{transform_indices = @transform_0, window_bounds = array<i64: 1, 16, 16>}, {transform_indices = @transform_1, window_bounds = array<i64: 1, 16, 16>}, {pipeline_mode = #tpu.pipeline_mode<synchronous>, transform_indices = @transform_2, window_bounds = array<i64: 16, 256>}, {pipeline_mode = #tpu.pipeline_mode<synchronous>, transform_indices = @transform_3, window_bounds = array<i64: 1, 64>}, {pipeline_mode = #tpu.pipeline_mode<synchronous>, transform_indices = @transform_4, window_bounds = array<i64: 64, 256>}, {pipeline_mode = #tpu.pipeline_mode<synchronous>, transform_indices = @transform_5, window_bounds = array<i64: 1, 64>}, {pipeline_mode = #tpu.pipeline_mode<synchronous>, transform_indices = @transform_6, window_bounds = array<i64: 64, 256>}, {pipeline_mode = #tpu.pipeline_mode<synchronous>, transform_indices = @transform_7, window_bounds = array<i64: 1, 32>}, {transform_indices = @transform_8, window_bounds = array<i64: 1, 16, 128>}]} {
    %c0 = arith.constant 0 : index
    %c0_0 = arith.constant 0 : index
    %c0_1 = arith.constant 0 : index
    %0 = vector.load %arg2[%c0, %c0_0, %c0_1] : memref<1x16x16xi8, #tpu.memory_space<vmem>>, vector<1x16x16xi8>
    %1 = vector.shape_cast %0 : vector<1x16x16xi8> to vector<16x16xi8>
    %2 = arith.sitofp %1 : vector<16x16xi8> to vector<16x16xf32>
    %cst = arith.constant 1.000000e+00 : f32
    %3 = vector.broadcast %cst : f32 to vector<16x16xf32>
    %4 = arith.subf %2, %3 : vector<16x16xf32>
    %cst_2 = arith.constant 1.000000e+30 : f32
    %5 = vector.broadcast %cst_2 : f32 to vector<16x16xf32>
    %6 = arith.mulf %4, %5 : vector<16x16xf32>
    %cst_3 = arith.constant dense<0.000000e+00> : vector<16xf32>
    %7 = vector.multi_reduction <add>, %2, %cst_3 [1] : vector<16x16xf32> to vector<16xf32>
    %8 = vector.shape_cast %7 : vector<16xf32> to vector<16x1xf32>
    %cst_4 = arith.constant 0.000000e+00 : f32
    %9 = vector.broadcast %cst_4 : f32 to vector<16x1xf32>
    %10 = arith.cmpf ogt, %8, %9 : vector<16x1xf32>
    %11 = arith.extui %10 : vector<16x1xi1> to vector<16x1xi32>
    %12 = arith.sitofp %11 : vector<16x1xi32> to vector<16x1xf32>
    %c0_5 = arith.constant 0 : index
    %c0_6 = arith.constant 0 : index
    %c0_7 = arith.constant 0 : index
    %13 = vector.load %arg1[%c0_5, %c0_6, %c0_7] : memref<1x16x16xf32, #tpu.memory_space<vmem>>, vector<1x16x16xf32>
    %14 = vector.shape_cast %13 : vector<1x16x16xf32> to vector<16x16xf32>
    %c0_8 = arith.constant 0 : index
    %c0_9 = arith.constant 0 : index
    %15 = vector.load %arg3[%c0_8, %c0_9] : memref<16x256xbf16, #tpu.memory_space<vmem>>, vector<16x256xbf16>
    %c0_10 = arith.constant 0 : index
    %c0_11 = arith.constant 0 : index
    %16 = vector.load %arg4[%c0_10, %c0_11] : memref<1x64xf32, #tpu.memory_space<vmem>>, vector<1x64xf32>
    %17 = arith.truncf %14 : vector<16x16xf32> to vector<16x16xbf16>
    %cst_12 = arith.constant dense<0.000000e+00> : vector<16x256xf32>
    %18 = tpu.matmul %17, %15, %cst_12 {dimension_numbers = #tpu.dot_dimension_numbers<[1], [0], [0], [1], [0, 0, 1, 1], [], []>} : vector<16x16xbf16>, vector<16x256xbf16>, vector<16x256xf32> -> vector<16x256xf32>
    %19 = vector.extract_strided_slice %18 {offsets = [0, 0], sizes = [16, 64], strides = [1, 1]} : vector<16x256xf32> to vector<16x64xf32>
    %20 = arith.truncf %19 : vector<16x64xf32> to vector<16x64xbf16>
    %21 = vector.extract_strided_slice %18 {offsets = [0, 128], sizes = [16, 2], strides = [1, 1]} : vector<16x256xf32> to vector<16x2xf32>
    %22 = tpu.transpose %21, [1, 0] : vector<16x2xf32> -> vector<2x16xf32>
    %23 = vector.extract_strided_slice %18 {offsets = [0, 130], sizes = [16, 2], strides = [1, 1]} : vector<16x256xf32> to vector<16x2xf32>
    %24 = vector.extract_strided_slice %23 {offsets = [0, 0], sizes = [16, 1], strides = [1, 1]} : vector<16x2xf32> to vector<16x1xf32>
    %25 = vector.extract_strided_slice %22 {offsets = [0, 0], sizes = [1, 16], strides = [1, 1]} : vector<2x16xf32> to vector<1x16xf32>
    %26 = vector.broadcast %24 : vector<16x1xf32> to vector<16x16xf32>
    %27 = vector.broadcast %25 : vector<1x16xf32> to vector<16x16xf32>
    %28 = arith.addf %26, %27 : vector<16x16xf32>
    %cst_13 = arith.constant 2.000000e-01 : f32
    %29 = vector.broadcast %cst_13 : f32 to vector<16x16xf32>
    %30 = arith.mulf %29, %28 : vector<16x16xf32>
    %31 = arith.maximumf %28, %30 : vector<16x16xf32>
    %32 = arith.addf %31, %6 : vector<16x16xf32>
    %cst_14 = arith.constant dense<0xFF800000> : vector<16xf32>
    %33 = vector.multi_reduction <maximumf>, %32, %cst_14 [1] : vector<16x16xf32> to vector<16xf32>
    %34 = vector.shape_cast %33 : vector<16xf32> to vector<16x1xf32>
    %35 = vector.broadcast %34 : vector<16x1xf32> to vector<16x16xf32>
    %36 = arith.subf %32, %35 : vector<16x16xf32>
    %37 = math.exp %36 : vector<16x16xf32>
    %cst_15 = arith.constant dense<0.000000e+00> : vector<16xf32>
    %38 = vector.multi_reduction <add>, %37, %cst_15 [1] : vector<16x16xf32> to vector<16xf32>
    %39 = vector.shape_cast %38 : vector<16xf32> to vector<16x1xf32>
    %40 = arith.truncf %37 : vector<16x16xf32> to vector<16x16xbf16>
    %41 = vector.extract_strided_slice %20 {offsets = [0, 0], sizes = [16, 32], strides = [1, 1]} : vector<16x64xbf16> to vector<16x32xbf16>
    %cst_16 = arith.constant dense<0.000000e+00> : vector<16x32xf32>
    %42 = tpu.matmul %40, %41, %cst_16 {dimension_numbers = #tpu.dot_dimension_numbers<[1], [0], [0], [1], [0, 0, 1, 1], [], []>} : vector<16x16xbf16>, vector<16x32xbf16>, vector<16x32xf32> -> vector<16x32xf32>
    %43 = tpu.reciprocal %39 {approx = true} : vector<16x1xf32> -> vector<16x1xf32>
    %44 = arith.mulf %43, %12 : vector<16x1xf32>
    %45 = vector.broadcast %44 : vector<16x1xf32> to vector<16x32xf32>
    %46 = arith.mulf %42, %45 : vector<16x32xf32>
    %47 = vector.extract_strided_slice %23 {offsets = [0, 1], sizes = [16, 1], strides = [1, 1]} : vector<16x2xf32> to vector<16x1xf32>
    %48 = vector.extract_strided_slice %22 {offsets = [1, 0], sizes = [1, 16], strides = [1, 1]} : vector<2x16xf32> to vector<1x16xf32>
    %49 = vector.broadcast %47 : vector<16x1xf32> to vector<16x16xf32>
    %50 = vector.broadcast %48 : vector<1x16xf32> to vector<16x16xf32>
    %51 = arith.addf %49, %50 : vector<16x16xf32>
    %cst_17 = arith.constant 2.000000e-01 : f32
    %52 = vector.broadcast %cst_17 : f32 to vector<16x16xf32>
    %53 = arith.mulf %52, %51 : vector<16x16xf32>
    %54 = arith.maximumf %51, %53 : vector<16x16xf32>
    %55 = arith.addf %54, %6 : vector<16x16xf32>
    %cst_18 = arith.constant dense<0xFF800000> : vector<16xf32>
    %56 = vector.multi_reduction <maximumf>, %55, %cst_18 [1] : vector<16x16xf32> to vector<16xf32>
    %57 = vector.shape_cast %56 : vector<16xf32> to vector<16x1xf32>
    %58 = vector.broadcast %57 : vector<16x1xf32> to vector<16x16xf32>
    %59 = arith.subf %55, %58 : vector<16x16xf32>
    %60 = math.exp %59 : vector<16x16xf32>
    %cst_19 = arith.constant dense<0.000000e+00> : vector<16xf32>
    %61 = vector.multi_reduction <add>, %60, %cst_19 [1] : vector<16x16xf32> to vector<16xf32>
    %62 = vector.shape_cast %61 : vector<16xf32> to vector<16x1xf32>
    %63 = arith.truncf %60 : vector<16x16xf32> to vector<16x16xbf16>
    %64 = vector.extract_strided_slice %20 {offsets = [0, 32], sizes = [16, 32], strides = [1, 1]} : vector<16x64xbf16> to vector<16x32xbf16>
    %cst_20 = arith.constant dense<0.000000e+00> : vector<16x32xf32>
    %65 = tpu.matmul %63, %64, %cst_20 {dimension_numbers = #tpu.dot_dimension_numbers<[1], [0], [0], [1], [0, 0, 1, 1], [], []>} : vector<16x16xbf16>, vector<16x32xbf16>, vector<16x32xf32> -> vector<16x32xf32>
    %66 = tpu.reciprocal %62 {approx = true} : vector<16x1xf32> -> vector<16x1xf32>
    %67 = arith.mulf %66, %12 : vector<16x1xf32>
    %68 = vector.broadcast %67 : vector<16x1xf32> to vector<16x32xf32>
    %69 = arith.mulf %65, %68 : vector<16x32xf32>
    %70 = tpu.concatenate %46, %69 in 1 : vector<16x32xf32>, vector<16x32xf32> -> vector<16x64xf32>
    %71 = vector.broadcast %16 : vector<1x64xf32> to vector<16x64xf32>
    %72 = arith.addf %70, %71 : vector<16x64xf32>
    %cst_21 = arith.constant 0.000000e+00 : f32
    %73 = vector.broadcast %cst_21 : f32 to vector<16x64xf32>
    %74 = arith.cmpf ogt, %72, %73 : vector<16x64xf32>
    %cst_22 = arith.constant 0.000000e+00 : f32
    %75 = vector.broadcast %cst_22 : f32 to vector<16x64xf32>
    %76 = arith.minimumf %72, %75 : vector<16x64xf32>
    %77 = math.exp %76 : vector<16x64xf32>
    %cst_23 = arith.constant 1.000000e+00 : f32
    %78 = vector.broadcast %cst_23 : f32 to vector<16x64xf32>
    %79 = arith.subf %77, %78 : vector<16x64xf32>
    %80 = arith.select %74, %72, %79 : vector<16x64xi1>, vector<16x64xf32>
    %c0_24 = arith.constant 0 : index
    %c0_25 = arith.constant 0 : index
    %81 = vector.load %arg5[%c0_24, %c0_25] : memref<64x256xbf16, #tpu.memory_space<vmem>>, vector<64x256xbf16>
    %c0_26 = arith.constant 0 : index
    %c0_27 = arith.constant 0 : index
    %82 = vector.load %arg6[%c0_26, %c0_27] : memref<1x64xf32, #tpu.memory_space<vmem>>, vector<1x64xf32>
    %83 = arith.truncf %80 : vector<16x64xf32> to vector<16x64xbf16>
    %cst_28 = arith.constant dense<0.000000e+00> : vector<16x256xf32>
    %84 = tpu.matmul %83, %81, %cst_28 {dimension_numbers = #tpu.dot_dimension_numbers<[1], [0], [0], [1], [0, 0, 1, 1], [], []>} : vector<16x64xbf16>, vector<64x256xbf16>, vector<16x256xf32> -> vector<16x256xf32>
    %85 = vector.extract_strided_slice %84 {offsets = [0, 0], sizes = [16, 64], strides = [1, 1]} : vector<16x256xf32> to vector<16x64xf32>
    %86 = arith.truncf %85 : vector<16x64xf32> to vector<16x64xbf16>
    %87 = vector.extract_strided_slice %84 {offsets = [0, 128], sizes = [16, 2], strides = [1, 1]} : vector<16x256xf32> to vector<16x2xf32>
    %88 = tpu.transpose %87, [1, 0] : vector<16x2xf32> -> vector<2x16xf32>
    %89 = vector.extract_strided_slice %84 {offsets = [0, 130], sizes = [16, 2], strides = [1, 1]} : vector<16x256xf32> to vector<16x2xf32>
    %90 = vector.extract_strided_slice %89 {offsets = [0, 0], sizes = [16, 1], strides = [1, 1]} : vector<16x2xf32> to vector<16x1xf32>
    %91 = vector.extract_strided_slice %88 {offsets = [0, 0], sizes = [1, 16], strides = [1, 1]} : vector<2x16xf32> to vector<1x16xf32>
    %92 = vector.broadcast %90 : vector<16x1xf32> to vector<16x16xf32>
    %93 = vector.broadcast %91 : vector<1x16xf32> to vector<16x16xf32>
    %94 = arith.addf %92, %93 : vector<16x16xf32>
    %cst_29 = arith.constant 2.000000e-01 : f32
    %95 = vector.broadcast %cst_29 : f32 to vector<16x16xf32>
    %96 = arith.mulf %95, %94 : vector<16x16xf32>
    %97 = arith.maximumf %94, %96 : vector<16x16xf32>
    %98 = arith.addf %97, %6 : vector<16x16xf32>
    %cst_30 = arith.constant dense<0xFF800000> : vector<16xf32>
    %99 = vector.multi_reduction <maximumf>, %98, %cst_30 [1] : vector<16x16xf32> to vector<16xf32>
    %100 = vector.shape_cast %99 : vector<16xf32> to vector<16x1xf32>
    %101 = vector.broadcast %100 : vector<16x1xf32> to vector<16x16xf32>
    %102 = arith.subf %98, %101 : vector<16x16xf32>
    %103 = math.exp %102 : vector<16x16xf32>
    %cst_31 = arith.constant dense<0.000000e+00> : vector<16xf32>
    %104 = vector.multi_reduction <add>, %103, %cst_31 [1] : vector<16x16xf32> to vector<16xf32>
    %105 = vector.shape_cast %104 : vector<16xf32> to vector<16x1xf32>
    %106 = arith.truncf %103 : vector<16x16xf32> to vector<16x16xbf16>
    %107 = vector.extract_strided_slice %86 {offsets = [0, 0], sizes = [16, 32], strides = [1, 1]} : vector<16x64xbf16> to vector<16x32xbf16>
    %cst_32 = arith.constant dense<0.000000e+00> : vector<16x32xf32>
    %108 = tpu.matmul %106, %107, %cst_32 {dimension_numbers = #tpu.dot_dimension_numbers<[1], [0], [0], [1], [0, 0, 1, 1], [], []>} : vector<16x16xbf16>, vector<16x32xbf16>, vector<16x32xf32> -> vector<16x32xf32>
    %109 = tpu.reciprocal %105 {approx = true} : vector<16x1xf32> -> vector<16x1xf32>
    %110 = arith.mulf %109, %12 : vector<16x1xf32>
    %111 = vector.broadcast %110 : vector<16x1xf32> to vector<16x32xf32>
    %112 = arith.mulf %108, %111 : vector<16x32xf32>
    %113 = vector.extract_strided_slice %89 {offsets = [0, 1], sizes = [16, 1], strides = [1, 1]} : vector<16x2xf32> to vector<16x1xf32>
    %114 = vector.extract_strided_slice %88 {offsets = [1, 0], sizes = [1, 16], strides = [1, 1]} : vector<2x16xf32> to vector<1x16xf32>
    %115 = vector.broadcast %113 : vector<16x1xf32> to vector<16x16xf32>
    %116 = vector.broadcast %114 : vector<1x16xf32> to vector<16x16xf32>
    %117 = arith.addf %115, %116 : vector<16x16xf32>
    %cst_33 = arith.constant 2.000000e-01 : f32
    %118 = vector.broadcast %cst_33 : f32 to vector<16x16xf32>
    %119 = arith.mulf %118, %117 : vector<16x16xf32>
    %120 = arith.maximumf %117, %119 : vector<16x16xf32>
    %121 = arith.addf %120, %6 : vector<16x16xf32>
    %cst_34 = arith.constant dense<0xFF800000> : vector<16xf32>
    %122 = vector.multi_reduction <maximumf>, %121, %cst_34 [1] : vector<16x16xf32> to vector<16xf32>
    %123 = vector.shape_cast %122 : vector<16xf32> to vector<16x1xf32>
    %124 = vector.broadcast %123 : vector<16x1xf32> to vector<16x16xf32>
    %125 = arith.subf %121, %124 : vector<16x16xf32>
    %126 = math.exp %125 : vector<16x16xf32>
    %cst_35 = arith.constant dense<0.000000e+00> : vector<16xf32>
    %127 = vector.multi_reduction <add>, %126, %cst_35 [1] : vector<16x16xf32> to vector<16xf32>
    %128 = vector.shape_cast %127 : vector<16xf32> to vector<16x1xf32>
    %129 = arith.truncf %126 : vector<16x16xf32> to vector<16x16xbf16>
    %130 = vector.extract_strided_slice %86 {offsets = [0, 32], sizes = [16, 32], strides = [1, 1]} : vector<16x64xbf16> to vector<16x32xbf16>
    %cst_36 = arith.constant dense<0.000000e+00> : vector<16x32xf32>
    %131 = tpu.matmul %129, %130, %cst_36 {dimension_numbers = #tpu.dot_dimension_numbers<[1], [0], [0], [1], [0, 0, 1, 1], [], []>} : vector<16x16xbf16>, vector<16x32xbf16>, vector<16x32xf32> -> vector<16x32xf32>
    %132 = tpu.reciprocal %128 {approx = true} : vector<16x1xf32> -> vector<16x1xf32>
    %133 = arith.mulf %132, %12 : vector<16x1xf32>
    %134 = vector.broadcast %133 : vector<16x1xf32> to vector<16x32xf32>
    %135 = arith.mulf %131, %134 : vector<16x32xf32>
    %136 = tpu.concatenate %112, %135 in 1 : vector<16x32xf32>, vector<16x32xf32> -> vector<16x64xf32>
    %137 = vector.broadcast %82 : vector<1x64xf32> to vector<16x64xf32>
    %138 = arith.addf %136, %137 : vector<16x64xf32>
    %cst_37 = arith.constant 0.000000e+00 : f32
    %139 = vector.broadcast %cst_37 : f32 to vector<16x64xf32>
    %140 = arith.cmpf ogt, %138, %139 : vector<16x64xf32>
    %cst_38 = arith.constant 0.000000e+00 : f32
    %141 = vector.broadcast %cst_38 : f32 to vector<16x64xf32>
    %142 = arith.minimumf %138, %141 : vector<16x64xf32>
    %143 = math.exp %142 : vector<16x64xf32>
    %cst_39 = arith.constant 1.000000e+00 : f32
    %144 = vector.broadcast %cst_39 : f32 to vector<16x64xf32>
    %145 = arith.subf %143, %144 : vector<16x64xf32>
    %146 = arith.select %140, %138, %145 : vector<16x64xi1>, vector<16x64xf32>
    %c0_40 = arith.constant 0 : index
    %c0_41 = arith.constant 0 : index
    %147 = vector.load %arg7[%c0_40, %c0_41] : memref<64x256xbf16, #tpu.memory_space<vmem>>, vector<64x256xbf16>
    %c0_42 = arith.constant 0 : index
    %c0_43 = arith.constant 0 : index
    %148 = vector.load %arg8[%c0_42, %c0_43] : memref<1x32xf32, #tpu.memory_space<vmem>>, vector<1x32xf32>
    %149 = arith.truncf %146 : vector<16x64xf32> to vector<16x64xbf16>
    %cst_44 = arith.constant dense<0.000000e+00> : vector<16x256xf32>
    %150 = tpu.matmul %149, %147, %cst_44 {dimension_numbers = #tpu.dot_dimension_numbers<[1], [0], [0], [1], [0, 0, 1, 1], [], []>} : vector<16x64xbf16>, vector<64x256xbf16>, vector<16x256xf32> -> vector<16x256xf32>
    %151 = vector.extract_strided_slice %150 {offsets = [0, 0], sizes = [16, 32], strides = [1, 1]} : vector<16x256xf32> to vector<16x32xf32>
    %152 = arith.truncf %151 : vector<16x32xf32> to vector<16x32xbf16>
    %153 = vector.extract_strided_slice %150 {offsets = [0, 128], sizes = [16, 1], strides = [1, 1]} : vector<16x256xf32> to vector<16x1xf32>
    %154 = tpu.transpose %153, [1, 0] : vector<16x1xf32> -> vector<1x16xf32>
    %155 = vector.extract_strided_slice %150 {offsets = [0, 129], sizes = [16, 1], strides = [1, 1]} : vector<16x256xf32> to vector<16x1xf32>
    %156 = vector.broadcast %155 : vector<16x1xf32> to vector<16x16xf32>
    %157 = vector.broadcast %154 : vector<1x16xf32> to vector<16x16xf32>
    %158 = arith.addf %156, %157 : vector<16x16xf32>
    %cst_45 = arith.constant 2.000000e-01 : f32
    %159 = vector.broadcast %cst_45 : f32 to vector<16x16xf32>
    %160 = arith.mulf %159, %158 : vector<16x16xf32>
    %161 = arith.maximumf %158, %160 : vector<16x16xf32>
    %162 = arith.addf %161, %6 : vector<16x16xf32>
    %cst_46 = arith.constant dense<0xFF800000> : vector<16xf32>
    %163 = vector.multi_reduction <maximumf>, %162, %cst_46 [1] : vector<16x16xf32> to vector<16xf32>
    %164 = vector.shape_cast %163 : vector<16xf32> to vector<16x1xf32>
    %165 = vector.broadcast %164 : vector<16x1xf32> to vector<16x16xf32>
    %166 = arith.subf %162, %165 : vector<16x16xf32>
    %167 = math.exp %166 : vector<16x16xf32>
    %cst_47 = arith.constant dense<0.000000e+00> : vector<16xf32>
    %168 = vector.multi_reduction <add>, %167, %cst_47 [1] : vector<16x16xf32> to vector<16xf32>
    %169 = vector.shape_cast %168 : vector<16xf32> to vector<16x1xf32>
    %170 = arith.truncf %167 : vector<16x16xf32> to vector<16x16xbf16>
    %cst_48 = arith.constant dense<0.000000e+00> : vector<16x32xf32>
    %171 = tpu.matmul %170, %152, %cst_48 {dimension_numbers = #tpu.dot_dimension_numbers<[1], [0], [0], [1], [0, 0, 1, 1], [], []>} : vector<16x16xbf16>, vector<16x32xbf16>, vector<16x32xf32> -> vector<16x32xf32>
    %172 = tpu.reciprocal %169 {approx = true} : vector<16x1xf32> -> vector<16x1xf32>
    %173 = arith.mulf %172, %12 : vector<16x1xf32>
    %174 = vector.broadcast %173 : vector<16x1xf32> to vector<16x32xf32>
    %175 = arith.mulf %171, %174 : vector<16x32xf32>
    %176 = vector.broadcast %148 : vector<1x32xf32> to vector<16x32xf32>
    %177 = arith.addf %175, %176 : vector<16x32xf32>
    %cst_49 = arith.constant 0.000000e+00 : f32
    %178 = vector.broadcast %cst_49 : f32 to vector<16x96xf32>
    %179 = tpu.concatenate %177, %178 in 1 : vector<16x32xf32>, vector<16x96xf32> -> vector<16x128xf32>
    %c0_50 = arith.constant 0 : index
    %c0_51 = arith.constant 0 : index
    %c0_52 = arith.constant 0 : index
    %180 = vector.load %arg9[%c0_50, %c0_51, %c0_52] : memref<1x16x128xf32, #tpu.memory_space<vmem>>, vector<1x16x128xf32>
    %181 = vector.shape_cast %180 : vector<1x16x128xf32> to vector<16x128xf32>
    %182 = vector.shape_cast %179 : vector<16x128xf32> to vector<1x16x128xf32>
    tpu.vector_store %arg9[%c0_50, %c0_51, %c0_52], %182 {strides = array<i32>} : memref<1x16x128xf32, #tpu.memory_space<vmem>>, vector<1x16x128xf32>,
    return
  }
  func.func @transform_0(%arg0: i32) -> (i32, i32, i32) {
    %c0_i32 = arith.constant 0 : i32
    %c0_i32_0 = arith.constant 0 : i32
    %c0_i32_1 = arith.constant 0 : i32
    return %arg0, %c0_i32, %c0_i32_0 : i32, i32, i32
  }
  func.func @transform_1(%arg0: i32) -> (i32, i32, i32) {
    %c0_i32 = arith.constant 0 : i32
    %c0_i32_0 = arith.constant 0 : i32
    %c0_i32_1 = arith.constant 0 : i32
    return %arg0, %c0_i32, %c0_i32_0 : i32, i32, i32
  }
  func.func @transform_2(%arg0: i32) -> (i32, i32) {
    %c0_i32 = arith.constant 0 : i32
    %c0_i32_0 = arith.constant 0 : i32
    %c0_i32_1 = arith.constant 0 : i32
    return %c0_i32, %c0_i32_0 : i32, i32
  }
  func.func @transform_3(%arg0: i32) -> (i32, i32) {
    %c0_i32 = arith.constant 0 : i32
    %c0_i32_0 = arith.constant 0 : i32
    %c0_i32_1 = arith.constant 0 : i32
    return %c0_i32, %c0_i32_0 : i32, i32
  }
  func.func @transform_4(%arg0: i32) -> (i32, i32) {
    %c0_i32 = arith.constant 0 : i32
    %c0_i32_0 = arith.constant 0 : i32
    %c0_i32_1 = arith.constant 0 : i32
    return %c0_i32, %c0_i32_0 : i32, i32
  }
  func.func @transform_5(%arg0: i32) -> (i32, i32) {
    %c0_i32 = arith.constant 0 : i32
    %c0_i32_0 = arith.constant 0 : i32
    %c0_i32_1 = arith.constant 0 : i32
    return %c0_i32, %c0_i32_0 : i32, i32
  }
  func.func @transform_6(%arg0: i32) -> (i32, i32) {
    %c0_i32 = arith.constant 0 : i32
    %c0_i32_0 = arith.constant 0 : i32
    %c0_i32_1 = arith.constant 0 : i32
    return %c0_i32, %c0_i32_0 : i32, i32
  }
  func.func @transform_7(%arg0: i32) -> (i32, i32) {
    %c0_i32 = arith.constant 0 : i32
    %c0_i32_0 = arith.constant 0 : i32
    %c0_i32_1 = arith.constant 0 : i32
    return %c0_i32, %c0_i32_0 : i32, i32
  }
  func.func @transform_8(%arg0: i32) -> (i32, i32, i32) {
    %c0_i32 = arith.constant 0 : i32
    %c0_i32_0 = arith.constant 0 : i32
    %c0_i32_1 = arith.constant 0 : i32
    return %arg0, %c0_i32, %c0_i32_0 : i32, i32, i32
  }
}

</mosaic_0001>

<bundles_post_ra>
// kernel: tpu_custom_call.1
= control target key start
LH: loop header
LB: loop body
LE: loop exit
PB: predicated region body
PF: predicated region fallthrough
CT: control target
= control target key end

     0   :  { %s2151_s0 = inlined_call_operand.hbm [shape: f32[8,16,16], index: 0, kind: input, shape index: {}]   ;;  %s2152_s1 = inlined_call_operand.hbm [shape: s8[8,16,16], index: 1, kind: input, shape index: {}]   ;;  %s2153_s2 = inlined_call_operand.hbm [shape: bf16[16,256], index: 2, kind: input, shape index: {}]   ;;  %s2154_s3 = inlined_call_operand.vmem [shape: f32[1,64], index: 3, kind: input, shape index: {}]   ;;  %s2155_s4 = inlined_call_operand.hbm [shape: bf16[64,256], index: 4, kind: input, shape index: {}]   ;;  %s2156_s5 = inlined_call_operand.vmem [shape: f32[1,64], index: 5, kind: input, shape index: {}]   ;;  %s2157_s6 = inlined_call_operand.hbm [shape: bf16[64,256], index: 6, kind: input, shape index: {}]   ;;  %s2158_s7 = inlined_call_operand.vmem [shape: f32[1,32], index: 7, kind: input, shape index: {}]   ;;  %s2159_s8 = inlined_call_operand.hbm [shape: f32[8,16,128], index: 8, kind: output, shape index: {}]  }
   0x1   :  { %2166 = sst [smem:[#allocation21_spill]] %s2153_s2 }
   0x2   :  { %2167 = sst [smem:[#allocation22_spill]] %s2155_s4 }
   0x3   :  { %2168 = sst [smem:[#allocation23_spill]] %s2157_s6 }
   0x4   :  { %13 = vsyncpa [#allocation3], 0 }
   0x5   :  { %15 = vsyncpa [#allocation3 + $0x1], 0 }
   0x6   :  { %16 = vsyncpa [#allocation6], 0 }
   0x7   :  { %18 = vsyncpa [#allocation6 + $0x1], 0 }
   0x8   :  { %19 = vsyncpa [#allocation9], 0 }
   0x9   :  { %20 = vsyncpa [#allocation4], 0 }
   0xa   :  { %22 = vsyncpa [#allocation4 + $0x1], 0  ;;  %s1856_s27 = smov 0   ;;  %s1858_s28 = smov 0  }
   0xb   :  { %s1860_s29 = smov 0   ;;  %s1862_s30 = smov 0  }
   0xc LB: > { %2169 = sst [smem:[#allocation17_spill]] %s1790_s29  ;;  %s1877_s9 = sadd.s32 4294967295, %s1794_s30   ;;  %s1794_s30 = sphi %s1862_s30, %s2185_s30   ;;  %s1790_s29 = sphi %s1860_s29, %s2187_s29   ;;  %s1786_s28 = sphi %s1858_s28, %s2189_s28   ;;  %s1782_s27 = sphi %s1856_s27, %s2188_s27  }
   0xd   : > { %s1275_s10 = sadd.s32 4294967294, %s1794_s30   ;;  %p48_p0 = scmp.ne.s32.totalorder %s1786_s28, %s1782_s27 }
   0xe   : > { %p49_p1 = scmp.eq.s32.totalorder %s1877_s9, 0  ;;  %p224_p2 = scmp.eq.s32.totalorder %s1877_s9, 7 }
   0xf   : > { %p230_p3 = scmp.eq.s32.totalorder %s1275_s10, 7  ;;  %p1276_p5 = scmp.ge.s32.totalorder %s1794_s30, 1 }
  0x10   : > { %p1886_p4 = por %p49_p1, %p48_p0  ;;  %p237_p7 = scmp.lt.s32.totalorder %s1794_s30, 9 }
  0x11   : > { %p1891_p6 = por %p230_p3, %p48_p0  ;;  %s2173_s2 = sld [smem:[#allocation21_spill]] }
  0x12   : > { %p1899_p8 = pnand %p1276_p5, %p237_p7  ;;  %s1796_s17 = smov [#allocation7]  }
  0x13   : > { %s2171_s12 = scalar_select %p1891_p6, 1, 0 }
  0x14   : > { %p1433_p9 = pneg %p1899_p8  ;;  %s250_s18 = sshll.u32 %s1796_s17, 4  ;;  %s251_s18 = int_to_ptr.vmem [resolvable:$true] %s250_s18 }
  0x15   : > { %2172 = sst [smem:[#allocation18_spill]] %s2171_s12  ;;  %s2160_s23 = smov 128  }
  0x16   : > { %p1907_p10 = pnand %p1433_p9, %p49_p1  ;;  %s2176_s4 = sld [smem:[#allocation22_spill]] }
  0x17   : > { %s248_s15 = sshll.u32 %s2173_s2, 4  ;;  %s2161_s24 = smov 8   ;;  %s249_s15 = int_to_ptr.hbm [resolvable:$true] %s248_s15 }
  0x18   : > { %1436 = dma.hbm_to_vmem [thread:$0]  (!%p1907_p10), %s249_s15, 256, %s251_s18, [#allocation6], %s2160_s23, %s2160_s23, %s2161_s24  }
  0x19   : > { %s1799_s25 = smov [#allocation8]   ;;  %s2177_s6 = sld [smem:[#allocation23_spill]] }
  0x1a   : > { %s267_s26 = sshll.u32 %s1799_s25, 4  ;;  %s1800_s15 = smov [#allocation10]   ;;  %s268_s26 = int_to_ptr.vmem [resolvable:$true] %s267_s26 }
  0x1b   : > { %s284_s17 = sshll.u32 %s1800_s15, 4  ;;  %s1928_s18 = sadd.s32 1, %s1794_s30   ;;  %s285_s17 = int_to_ptr.vmem [resolvable:$true] %s284_s17 }
  0x1c   : > { %s265_s22 = sshll.u32 %s2176_s4, 4  ;;  %2178 = sst [smem:[#allocation19_spill]] %s1928_s18  ;;  %s266_s22 = int_to_ptr.hbm [resolvable:$true] %s265_s22 }
  0x1d   : > { %1439 = dma.hbm_to_vmem [thread:$0]  (!%p1907_p10), %s266_s22, 1024, %s268_s26, [#allocation9], %s2160_s23, %s2160_s23, %s2161_s24  }
  0x1e   : > { %s32_s20 = ssub.s32 %s1794_s30, %s1928_s18  ;;  %s35_s21 = sadd.s32 1, %s1790_s29 }
  0x1f   : > { %s282_s14 = sshll.u32 %s2177_s6, 4  ;;  %p33_p11 = scmp.eq.s32.totalorder %s32_s20, 0  ;;  %s283_s14 = int_to_ptr.hbm [resolvable:$true] %s282_s14 }
  0x20   : > { %1442 = dma.hbm_to_vmem [thread:$0]  (!%p1907_p10), %s283_s14, 1024, %s285_s17, [#allocation9], %s2160_s23, %s2160_s23, %s2161_s24  }
  0x21   : > { %p42_p12 = scmp.ne.s32.totalorder %s1790_s29, %s1786_s28  ;;  %p43_p13 = scmp.eq.s32.totalorder %s1794_s30, 0 }
  0x22   : > { %p1457_p0 = scmp.lt.s32.totalorder %s1794_s30, 8  ;;  %s1952_s19 = sand.u32 1, %s1790_s29  }
  0x23   : > { %s1943_s22 = scalar_select %p33_p11, %s1790_s29, %s35_s21  }
  0x24   : > { %p44_p3 = por %p43_p13, %p42_p12  ;;  %p1947_p5 = por %p224_p2, %p42_p12 }
  0x25   : > { %2179 = sst [smem:[#allocation20_spill]] %s1943_s22  ;;  %s1390_s26 = sshll.u32 %s1794_s30, 4 }
  0x26   : > { %s1281_s10 = sshll.u32 %s1952_s19, 4  ;;  %s310_s15 = scalar_lea.hbm %s2151_s0, %s1390_s26 }
  0x27   : > { %s311_s17 = sshll.u32 %s310_s15, 4  ;;  %s305_s20 = scalar_lea.vmem [#allocation2], %s1281_s10  ;;  %s312_s17 = int_to_ptr.hbm [resolvable:$true] %s311_s17 }
  0x28   : > { %s313_s21 = sshll.u32 %s305_s20, 4  ;;  %p1961_p2 = pnand %p1457_p0, %p44_p3  ;;  %s314_s21 = int_to_ptr.vmem [resolvable:$true] %s313_s21 }
  0x29   : > { %s323_s24 = sand.u32 1, %s1794_s30   ;;  %s1284_s2 = sshll.u32 %s1952_s19, 2 }
  0x2a   : > { %s302_s4 = scalar_lea.sflag [#allocation3], %s1952_s19  ;;  %s1656_s6 = sshra.s32 %s312_s17, 4  ;;  %s1657_s6 = int_to_ptr.hbm [resolvable:$true] %s1656_s6 }
  0x2b   : > { %s1658_s22 = scalar_lea.hbm %s1657_s6, 16  ;;  %p1660_p9 = pneg %p1961_p2 }
  0x2c   : > { %p1659_p7 = scmp.ne.s32.totalorder %s1657_s6, %s1658_s22  ;;  %s1663_s13 = scalar_lea.hbm %s2151_s0, 128 }
  0x2d   : > { %p1664_p12 = scmp.lt.s32.totalorder %s1657_s6, %s2151_s0  ;;  %p1665_p13 = scmp.lt.s32.totalorder %s1663_s13, %s1658_s22 }
  0x2e   : > { %p1661_p10 = pnand %p1660_p9, %p1659_p7 }
  0x2f   : > { %p1666_p0 = por %p1665_p13, %p1664_p12 }
  0x30   : > { %p1662_p11 = pneg %p1661_p10 }
  0x32   : > { %p1667_p3 = pnand %p1666_p0, %p1662_p11 }
  0x34   : > { %1670 = shalt.err (!%p1667_p3)
}
  0x35   : > { %s2182_s19 = smov 8   ;;  %s2183_s20 = smov 128  }
  0x36   : > { %1446 = dma.hbm_to_vmem [thread:$0]  (!%p1961_p2), %s312_s17, 256, %s314_s21, %s302_s4, %s2183_s20, %s2183_s20, %s2182_s19  }
  0x37   : > { %s1391_s29 = sshll.u32 %s1794_s30, 2  ;;  %s327_s18 = scalar_lea.vmem [#allocation5], %s1284_s2 }
  0x38   : > { %s335_s26 = sshll.u32 %s327_s18, 4  ;;  %s332_s14 = scalar_lea.hbm %s2152_s1, %s1391_s29  ;;  %s336_s26 = int_to_ptr.vmem [resolvable:$true] %s335_s26 }
  0x39   : > { %s333_s6 = sshll.u32 %s332_s14, 4  ;;  %s324_s22 = scalar_lea.sflag [#allocation6], %s323_s24  ;;  %s334_s6 = int_to_ptr.hbm [resolvable:$true] %s333_s6 }
  0x3a   : > { %s1686_s13 = sshra.s32 %s334_s6, 4  ;;  %s1693_s2 = scalar_lea.hbm %s2152_s1, 32  ;;  %s1687_s13 = int_to_ptr.hbm [resolvable:$true] %s1686_s13 }
  0x3b   : > { %s1688_s15 = scalar_lea.hbm %s1687_s13, 4  ;;  %p1694_p12 = scmp.lt.s32.totalorder %s1687_s13, %s2152_s1 }
  0x3c   : > { %p1689_p7 = scmp.ne.s32.totalorder %s1687_s13, %s1688_s15  ;;  %p1695_p13 = scmp.lt.s32.totalorder %s1693_s2, %s1688_s15 }
  0x3e   : > { %p1691_p10 = pnand %p1689_p7, %p1660_p9  ;;  %p1696_p0 = por %p1695_p13, %p1694_p12 }
  0x40   : > { %p1692_p11 = pneg %p1691_p10 }
  0x42   : > { %p1697_p3 = pnand %p1696_p0, %p1692_p11 }
  0x44   : > { %1700 = shalt.err (!%p1697_p3)
}
  0x45   : > { %s1801_s29 = smov 32   ;;  %s1802_s12 = smov 2  }
  0x46   : > { %1449 = dma.hbm_to_vmem [thread:$0]  (!%p1961_p2), %s334_s6, 64, %s336_s26, %s324_s22, %s1801_s29, %s1801_s29, %s1802_s12  }
  0x47   : > { %347 = sbr.rel (%p1899_p8) target bundleno = 2138 (0x85a), region = 52  ;;  %s2002_s24 = sand.u32 (!%p1899_p8), 1, %s1786_s28  }
  0x48   : > { %s1288_s19 = sshll.u32 (!%p1899_p8), %s2002_s24, 4  ;;  %s350_s20 = scalar_lea.sflag (!%p1899_p8), [#allocation3], %s2002_s24 }
  0x49   : > { %s353_s10 = scalar_lea.vmem (!%p1899_p8), [#allocation2], %s1288_s19 }
  0x4c   : > { %1761 = dma.done.wait (%p1886_p4), %s350_s20, 256  }
  0x4d   : > { %1763 = vsyncadd (%p1886_p4), %s350_s20, 4294967040  ;;  %s359_s16 = sand.u32 1, %s1877_s9   ;;  %s1289_s23 = sshll.u32 %s2002_s24, 2 }
  0x4e   : > { %s360_s26 = scalar_lea.sflag [#allocation6], %s359_s16  ;;  %s2014_s14 = scalar_lea.vmem [#allocation5], %s1289_s23 }
  0x4f   : > { %1765 = dma.done.wait (%p1886_p4), %s360_s26, 64  }
  0x50   : > { %1767 = vsyncadd (%p1886_p4), %s360_s26, 4294967232 }
  0x51   : > { %1769 = dma.done.wait (%p49_p1), [#allocation6], 256  }
  0x52   : > { %1771 = vsyncadd (%p49_p1), [#allocation6], 4294967040 }
  0x53   : > { %1773 = dma.done.wait (%p49_p1), [#allocation9], 2048  }
  0x54   : > { %1775 = vsyncadd (%p49_p1), [#allocation9], 4294965248  ;;  %v1803_v0 = vmov 3   ;;  %v1804_v1 = vmov 2   ;;  %v1392_v2 = vld [vmem:[#allocation7 + $0x4] sm:$0xf] }
  0x55   : > { %1509 = vset.pattern.permute.xlu0 %v1803_v0  ;;  %1510 = vset.pattern.permute.xlu2 %v1804_v1  ;;  %v1302_v3 = vld [vmem:[#allocation7 + $0x8] sm:$0xf0]  ;;  %v442_v6 = vld [vmem:[%s353_s10 + $0x8] sm:$0xff]  ;;  %v1393_v8 = vld [vmem:[#allocation7 + $0x4] sm:$0xf0]  ;;  %vm428_vm0 = vcmask 130048  }
  0x56   : > { %v441_v4 = vld [vmem:[%s353_s10] sm:$0xff]  ;;  %v1305_v5 = vor.u32 %v1392_v2, %v1302_v3  ;;  %v1300_v7 = vld [vmem:[#allocation7] sm:$0xf]  ;;  %s1805_s11 = smov 96   ;;  %s1807_s6 = smov 32   ;;  %vm659_vm3 = vcmask 261120  }
  0x57   : > { %v446_v9 = vpack.c.bf16 %v442_v6, %v441_v4  ;;  %v1301_v10 = vor.u32 %v1393_v8, %v1300_v7  ;;  %v1412_v20 = vld [vmem:[%s2014_s14] sm:$0xf]   ;;  %vm729_vm6 = vcmask 523264   ;;  %s1410_s18 = sshll.u32 %s1877_s9, 4  ;;  %s416_s20 = scalar_lea.vmem [#allocation11], %s1288_s19 }
  0x58   : > { %481 = vmatpush.bf16.msra.mxu1 %v1305_v5  ;;  %v1413_v23 = vunpack.c.0.s8 %v1412_v20  ;;  %v1414_v24 = vunpack.c.1.s8 %v1412_v20  ;;  %s1147_s12 = scalar_lea.hbm %s2159_s8, %s1410_s18  ;;  %s1148_s10 = sshll.u32 %s416_s20, 4  ;;  %s1149_s10 = int_to_ptr.vmem [resolvable:$true] %s1148_s10 }
  0x59   : > { %467 = vmatpush.bf16.msra.mxu0 %v1301_v10  ;;  %s1150_s16 = sshll.u32 %s1147_s12, 4  ;;  %s1136_s9 = scalar_lea.sflag [#allocation4], %s2002_s24  ;;  %s1151_s16 = int_to_ptr.hbm [resolvable:$true] %s1150_s16 }
  0x5a   : > { %v422_v25 = vcvt.s32.f32 %v1413_v23  ;;  %v2033_v26 = vcvt.s32.f32 %v1414_v24  ;;  %s1730_s23 = sshra.s32 %s1151_s16, 4  ;;  %s1731_s23 = int_to_ptr.hbm [resolvable:$true] %s1730_s23 }
  0x5b   : > { %1307 = vmatmul.msk.bf16.vlgmr.msra.gmra.mxu1 %vm428_vm0, %v446_v9  ;;  %s1732_s26 = scalar_lea.hbm %s1731_s23, 16  ;;  %p1737_p2 = scmp.lt.s32.totalorder %s1731_s23, %s2159_s8 }
  0x5c   : > { %1306 = vmatmul.msk.bf16.vlgmr.msra.gmra.mxu0 %vm428_vm0, %v446_v9  ;;  %v1294_v30 = vadd.f32 -1.0, %v422_v25  ;;  %v1295_v33 = vadd.f32 -1.0, %v2033_v26  ;;  %p1733_p1 = scmp.ne.s32.totalorder %s1731_s23, %s1732_s26 }
  0x5e   : > { %v2036_v40 = vmul.f32 1e+30, %v1294_v30  ;;  %v2038_v42 = vmul.f32 1e+30, %v1295_v33  ;;  %p1734_p4 = pnand %p1733_p1, %p1947_p5 }
  0x60   : > { %p1735_p8 = pneg %p1734_p4 }
  0xd8   : > { %v483_v11 = vpop.f32.mrf.mxu1 }
  0xd9   : > { %490 = vxpose.xlu1.b32.start [1/2] (short) (narrow) %v483_v11, 8  ;;  %524 = vperm.xlu2 %1510, %v483_v11   ;;  %v469_v13 = vpop.f32.mrf.mxu0 }
  0xda   : > { %590 = vperm.xlu0 %1509, %v483_v11   ;;  %v488_v14 = vpack.c.bf16 %v469_v13, %v469_v13 }
  0xdc   : > { %v562_v16 = vunpack.c.l.b16 %v488_v14  ;;  %v432_v14 = vsel %vm428_vm0, %v2033_v26, 0.0 }
  0xe0   : > { %v485_v12 = vpop.f32.mrf.mxu1 }
  0xe1   : > { %529 = vperm.xlu2 %1510, %v485_v12   ;;  %491 = vxpose.xlu1.b32.end [2/2] (short) (narrow) %v485_v12, 8  ;;  %v471_v15 = vpop.f32.mrf.mxu0 }
  0xe2   : > { %594 = vperm.xlu0 %1509, %v485_v12   ;;  %v489_v17 = vpack.c.bf16 %v471_v15, %v471_v15  ;;  %v429_v12 = vsel %vm428_vm0, %v422_v25, 0.0 }
  0xe4   : > { %v563_v18 = vunpack.c.l.b16 %v489_v17 }
  0xe6   : > { %v564_v19 = vpack.c.b16 %v563_v18, %v562_v16 }
  0xe8   : > { %576 = vmatpush.bf16.msra.mxu2 %v564_v19 }
  0xe9   : > { %625 = vrot.lane.b32.xlu2 %v564_v19, %s1805_s11 }
 0x133   : > { %v525_v21 = vpop.permute.xlu2 %524 }
 0x134   : > { %1511 = vset.pattern.permute.xlu1 %v1803_v0 }
 0x13b   : > { %v530_v31 = vpop.permute.xlu2 %529 }
 0x143   : > { %v626_v56 = vpop.permute.xlu2 %625 }
 0x144   : > { %638 = vmatpush.bf16.msra.mxu3 %v626_v56  ;;  %v1394_v56 = vld [vmem:[#allocation8 + $0x4] sm:$0xf] }
 0x14c   : > { %v591_v22 = vpop.permute.xlu0 %590 }
 0x154   : > { %v595_v32 = vpop.permute.xlu0 %594 }
 0x17d   : > { %v506_v27 = vpop.trf.xlu1 }
 0x17e   : > { %v532_v28 = vperm.slane %v506_v27, 0  ;;  %v597_v29 = vperm.slane %v506_v27, 1 }
 0x180   : > { %v533_v34 = vadd.f32 %v532_v28, %v525_v21  ;;  %v534_v35 = vadd.f32 %v532_v28, %v530_v31  ;;  %v598_v36 = vadd.f32 %v597_v29, %v591_v22  ;;  %v599_v37 = vadd.f32 %v597_v29, %v595_v32 }
 0x181   : > { %v1806_v21 = vmov 0.0  }
 0x182   : > { %v535_v38 = vmul.f32 0.2, %v533_v34  ;;  %v600_v39 = vmul.f32 0.2, %v598_v36  ;;  %v601_v41 = vmul.f32 0.2, %v599_v37 }
 0x183   : > { %v536_v43 = vmul.f32 0.2, %v534_v35 }
 0x184   : > { %v602_v44 = vmax.f32 %v598_v36, %v600_v39  ;;  %v537_v45 = vmax.f32 %v533_v34, %v535_v38  ;;  %v603_v46 = vmax.f32 %v599_v37, %v601_v41  ;;  %v1400_v34 = vld [vmem:[#allocation8 + $0x34] sm:$0xf]  ;;  %v1338_v36 = vld [vmem:[#allocation8 + $0x30] sm:$0xf]  ;;  %v1401_v38 = vld [vmem:[#allocation8 + $0x34] sm:$0xf0] }
 0x185   : > { %v538_v52 = vmax.f32 %v534_v35, %v536_v43  ;;  %v1340_v35 = vld [vmem:[#allocation8 + $0x38] sm:$0xf0]  ;;  %v1339_v39 = vor.u32 %v1401_v38, %v1338_v36  ;;  %v1398_v41 = vld [vmem:[#allocation8 + $0x24] sm:$0xf]  ;;  %v1332_v43 = vld [vmem:[#allocation8 + $0x28] sm:$0xf0] }
 0x186   : > { %v604_v47 = vadd.f32 %v602_v44, %v2036_v40  ;;  %v539_v48 = vadd.f32 %v537_v45, %v2036_v40  ;;  %v605_v49 = vadd.f32 %v603_v46, %v2038_v42  ;;  %v1343_v37 = vor.u32 %v1400_v34, %v1340_v35  ;;  %v1330_v44 = vld [vmem:[#allocation8 + $0x20] sm:$0xf]  ;;  %v1399_v46 = vld [vmem:[#allocation8 + $0x24] sm:$0xf0] }
 0x187   : > { %v540_v54 = vadd.f32 %v538_v52, %v2038_v42  ;;  %737 = vmatpush.bf16.msrb.mxu0 %v1339_v39  ;;  %v1335_v45 = vor.u32 %v1398_v41, %v1332_v43 }
 0x188   : > { %v606_v50 = vsel %vm428_vm0, %v604_v47, -inf  ;;  %v541_v51 = vsel %vm428_vm0, %v539_v48, -inf  ;;  %v609_v53 = vsel %vm428_vm0, %v605_v49, -inf  ;;  %751 = vmatpush.bf16.msrb.mxu1 %v1343_v37 }
 0x189   : > { %607 = vmax.xlane.f32.xlu0 %v606_v50  ;;  %542 = vmax.xlane.f32.xlu2 %v541_v51  ;;  %v544_v55 = vsel %vm428_vm0, %v540_v54, -inf  ;;  %v1322_v50 = vld [vmem:[#allocation8 + $0x10] sm:$0xf] }
 0x18a   : > { %610 = vmax.xlane.f32.xlu1 %v609_v53  ;;  %v1397_v53 = vld [vmem:[#allocation8 + $0x14] sm:$0xf0] }
 0x18c   : > { %752 = vmatpush.bf16.msrb.mxu1 %v1335_v45 }
 0x191   : > { %545 = vmax.xlane.f32.xlu0 %v544_v55 }
 0x1fc   : > { %v608_v57 = vpop.xlane.xlu0 %607  ;;  %v543_v60 = vpop.xlane.xlu2 %542 }
 0x1fd   : > { %v611_v58 = vpop.xlane.xlu1 %610  ;;  %v612_v59 = vsub.f32 %v604_v47, %v608_v57  ;;  %v547_v0 = vsub.f32 %v539_v48, %v543_v60  ;;  %v1331_v47 = vor.u32 %v1399_v46, %v1330_v44  ;;  %v1396_v48 = vld [vmem:[#allocation8 + $0x14] sm:$0xf]  ;;  %v1316_v57 = vld [vmem:[#allocation8 + $0x8] sm:$0xf0]  ;;  %v1314_v60 = vld [vmem:[#allocation8] sm:$0xf] }
 0x1fe   : > { %v613_v61 = vsub.f32 %v605_v49, %v611_v58  ;;  %v1324_v49 = vld [vmem:[#allocation8 + $0x18] sm:$0xf0] }
 0x1ff   : > { %v614_v62 = vmul.f32 1.442695, %v612_v59  ;;  %v549_v2 = vmul.f32 1.442695, %v547_v0  ;;  %738 = vmatpush.bf16.msrb.mxu0 %v1331_v47  ;;  %v1327_v52 = vor.u32 %v1396_v48, %v1324_v49  ;;  %v1319_v59 = vor.u32 %v1394_v56, %v1316_v57 }
 0x200   : > { %v616_v63 = vmul.f32 1.442695, %v613_v61  ;;  %v1395_v61 = vld [vmem:[#allocation8 + $0x4] sm:$0xf0] }
 0x201   : > { %1518 = vpow2.f32 %v614_v62  ;;  %753 = vmatpush.bf16.msrb.mxu1 %v1327_v52 }
 0x202   : > { %1520 = vpow2.f32 %v616_v63  ;;  %v1315_v63 = vor.u32 %v1395_v61, %v1314_v60 }
 0x203   : > { %1522 = vpow2.f32 %v549_v2 }
 0x204   : > { %v546_v3 = vpop.xlane.xlu0 %545 }
 0x205   : > { %v548_v4 = vsub.f32 %v540_v54, %v546_v3  ;;  %v1323_v54 = vor.u32 %v1397_v53, %v1322_v50  ;;  %754 = vmatpush.bf16.msrb.mxu1 %v1319_v59  ;;  %v1515_v3 = vld [vmem:[%s2154_s3] ss:$0 sm:$0xff] }
 0x207   : > { %v1519_v5 = vpop.eup %1518  ;;  %v551_v6 = vmul.f32 1.442695, %v548_v4  ;;  %739 = vmatpush.bf16.msrb.mxu0 %v1323_v54 }
 0x208   : > { %v1521_v7 = vpop.eup %1520  ;;  %v618_v8 = vsel %vm428_vm0, %v1519_v5, 0.0 }
 0x209   : > { %1524 = vpow2.f32 %v551_v6  ;;  %v621_v9 = vsel %vm428_vm0, %v1521_v7, 0.0  ;;  %619 = vadd.xlane.f32.xlu2 %v618_v8  ;;  %v624_v10 = vpack.c.bf16 %v1521_v7, %v1519_v5  ;;  %v1523_v11 = vpop.eup %1522 }
 0x20a   : > { %622 = vadd.xlane.f32.xlu0 %v621_v9  ;;  %v553_v16 = vsel %vm428_vm0, %v1523_v11, 0.0 }
 0x20b   : > { %1309 = vmatmul.msk.bf16.vlgmr.msra.gmra.mxu3 %vm428_vm0, %v624_v10  ;;  %740 = vmatpush.bf16.msrb.mxu0 %v1315_v63 }
 0x20f   : > { %v1525_v13 = vpop.eup %1524 }
 0x210   : > { %v559_v15 = vpack.c.bf16 %v1525_v13, %v1523_v11  ;;  %v556_v17 = vsel %vm428_vm0, %v1525_v13, 0.0 }
 0x211   : > { %430 = vadd.xlane.f32.xlu2 %v429_v12 }
 0x212   : > { %433 = vadd.xlane.f32.xlu0 %v432_v14  ;;  %1308 = vmatmul.msk.bf16.vlgmr.msra.gmra.mxu2 %vm428_vm0, %v559_v15 }
 0x219   : > { %554 = vadd.xlane.f32.xlu2 %v553_v16 }
 0x21a   : > { %557 = vadd.xlane.f32.xlu0 %v556_v17 }
 0x27c   : > { %v620_v18 = vpop.xlane.xlu2 %619 }
 0x27d   : > { %v623_v19 = vpop.xlane.xlu0 %622  ;;  %1526 = vrcp.f32 %v620_v18 }
 0x27e   : > { %1528 = vrcp.f32 %v623_v19 }
 0x283   : > { %v1527_v23 = vpop.eup %1526 }
 0x284   : > { %v431_v20 = vpop.xlane.xlu2 %430  ;;  %v1529_v29 = vpop.eup %1528 }
 0x285   : > { %vm435_vm1 = vcmp.gt.f32.partialorder %v431_v20, 0.0  ;;  %v434_v24 = vpop.xlane.xlu0 %433 }
 0x286   : > { %v2057_v22 = vsel %vm435_vm1, 1.0, %v1806_v21  ;;  %vm436_vm2 = vcmp.gt.f32.partialorder %v434_v24, 0.0 }
 0x287   : > { %v647_v25 = vmul.f32 %v1527_v23, %v2057_v22  ;;  %v2061_v28 = vsel %vm436_vm2, 1.0, %v1806_v21 }
 0x288   : > { %v648_v30 = vmul.f32 %v1529_v29, %v2061_v28 }
 0x28c   : > { %v555_v33 = vpop.xlane.xlu2 %554 }
 0x28d   : > { %1530 = vrcp.f32 %v555_v33  ;;  %v558_v62 = vpop.xlane.xlu0 %557 }
 0x28e   : > { %v640_v26 = vpop.f32.mrf.mxu3  ;;  %1532 = vrcp.f32 %v558_v62 }
 0x28f   : > { %v649_v27 = vmul.f32 %v647_v25, %v640_v26 }
 0x291   : > { %653 = vrot.lane.b32.xlu2 %v649_v27, %s1807_s6 }
 0x293   : > { %v1531_v51 = vpop.eup %1530 }
 0x294   : > { %v585_v55 = vmul.f32 %v1531_v51, %v2057_v22  ;;  %v1533_v6 = vpop.eup %1532 }
 0x295   : > { %v578_v58 = vpop.f32.mrf.mxu2  ;;  %v586_v9 = vmul.f32 %v1533_v6, %v2061_v28 }
 0x296   : > { %v642_v31 = vpop.f32.mrf.mxu3  ;;  %v587_v2 = vmul.f32 %v585_v55, %v578_v58 }
 0x297   : > { %v650_v32 = vmul.f32 %v648_v30, %v642_v31 }
 0x299   : > { %655 = vrot.lane.b32.xlu0 %v650_v32, %s1807_s6 }
 0x29d   : > { %v580_v7 = vpop.f32.mrf.mxu2 }
 0x29e   : > { %v588_v10 = vmul.f32 %v586_v9, %v580_v7 }
 0x2eb   : > { %v654_v0 = vpop.permute.xlu2 %653 }
 0x2ec   : > { %v660_v4 = vsel %vm659_vm3, %v587_v2, %v654_v0 }
 0x2ed   : > { %v665_v5 = vadd.f32 %v1515_v3, %v660_v4 }
 0x2ef   : > { %v669_v8 = vmin.f32 %v665_v5, 0.0  ;;  %vm667_vm4 = vcmp.gt.f32.partialorder %v665_v5, 0.0 }
 0x2f1   : > { %v671_v11 = vmul.f32 1.442695, %v669_v8 }
 0x2f3   : > { %1534 = vpow2.f32 %v671_v11 }
 0x2f9   : > { %v1535_v17 = vpop.eup %1534 }
 0x2fa   : > { %v1310_v18 = vadd.f32 -1.0, %v1535_v17 }
 0x2fc   : > { %v677_v21 = vsel %vm667_vm4, %v665_v5, %v1310_v18 }
 0x30b   : > { %v656_v12 = vpop.permute.xlu0 %655 }
 0x30c   : > { %v661_v13 = vsel %vm659_vm3, %v588_v10, %v656_v12 }
 0x30d   : > { %v666_v14 = vadd.f32 %v1515_v3, %v661_v13 }
 0x30f   : > { %v670_v15 = vmin.f32 %v666_v14, 0.0  ;;  %vm668_vm5 = vcmp.gt.f32.partialorder %v666_v14, 0.0 }
 0x311   : > { %v673_v16 = vmul.f32 1.442695, %v670_v15 }
 0x313   : > { %1536 = vpow2.f32 %v673_v16 }
 0x319   : > { %v1537_v19 = vpop.eup %1536 }
 0x31a   : > { %v1311_v20 = vadd.f32 -1.0, %v1537_v19 }
 0x31c   : > { %v678_v23 = vsel %vm668_vm5, %v666_v14, %v1311_v20 }
 0x31d   : > { %v688_v24 = vpack.c.bf16 %v678_v23, %v677_v21 }
 0x31f   : > { %1344 = vmatmul.msk.bf16.vlgmr.msrb.gmra.mxu0 %vm729_vm6, %v688_v24  ;;  %1345 = vmatmul.msk.bf16.vlgmr.msrb.gmra.mxu1 %vm729_vm6, %v688_v24 }
 0x39c   : > { %v742_v25 = vpop.f32.mrf.mxu0  ;;  %v756_v26 = vpop.f32.mrf.mxu1 }
 0x39d   : > { %763 = vxpose.xlu2.b32.start [1/2] (short) (narrow) %v756_v26, 8  ;;  %863 = vperm.xlu0 %1509, %v756_v26   ;;  %v761_v27 = vpack.c.bf16 %v742_v25, %v742_v25 }
 0x39f   : > { %v835_v32 = vunpack.c.l.b16 %v761_v27 }
 0x3a4   : > { %v744_v29 = vpop.f32.mrf.mxu0  ;;  %v758_v30 = vpop.f32.mrf.mxu1 }
 0x3a5   : > { %v762_v31 = vpack.c.bf16 %v744_v29, %v744_v29  ;;  %1512 = vset.pattern.permute.xlu0 %v1804_v1  ;;  %764 = vxpose.xlu2.b32.end [2/2] (short) (narrow) %v758_v30, 8 }
 0x3a6   : > { %867 = vperm.xlu1 %1511, %v758_v30   ;;  %797 = vperm.xlu0 %1512, %v756_v26  }
 0x3a7   : > { %v836_v33 = vunpack.c.l.b16 %v762_v31 }
 0x3a9   : > { %v837_v34 = vpack.c.b16 %v836_v33, %v835_v32 }
 0x3ab   : > { %849 = vmatpush.bf16.msrb.mxu2 %v837_v34 }
 0x3ae   : > { %802 = vperm.xlu0 %1512, %v758_v30  }
 0x40e   : > { %898 = vrot.lane.b32.xlu2 %v837_v34, %s1805_s11  ;;  %s1736_s11 = scalar_lea.hbm %s2159_s8, 128 }
 0x40f   : > { %v864_v35 = vpop.permute.xlu0 %863  ;;  %p1738_p9 = scmp.lt.s32.totalorder %s1736_s11, %s1732_s26 }
 0x411   : > { %p1739_p7 = por %p1738_p9, %p1737_p2 }
 0x413   : > { %p1740_p10 = pnand %p1739_p7, %p1735_p8 }
 0x418   : > { %v798_v36 = vpop.permute.xlu0 %797  ;;  %v868_v41 = vpop.permute.xlu1 %867 }
 0x420   : > { %v803_v43 = vpop.permute.xlu0 %802 }
 0x436   : > { %v779_v37 = vpop.trf.xlu2 }
 0x437   : > { %v805_v38 = vperm.slane %v779_v37, 0  ;;  %v870_v39 = vperm.slane %v779_v37, 1  ;;  %v1376_v37 = vld [vmem:[#allocation10 + $0x30] sm:$0xf] }
 0x439   : > { %v806_v44 = vadd.f32 %v805_v38, %v798_v36  ;;  %v871_v45 = vadd.f32 %v870_v39, %v864_v35  ;;  %v872_v1 = vadd.f32 %v870_v39, %v868_v41  ;;  %v807_v46 = vadd.f32 %v805_v38, %v803_v43  ;;  %v1408_v35 = vld [vmem:[#allocation10 + $0x34] sm:$0xf]  ;;  %v1378_v36 = vld [vmem:[#allocation10 + $0x38] sm:$0xf0]  ;;  %v1409_v39 = vld [vmem:[#allocation10 + $0x34] sm:$0xf0] }
 0x43a   : > { %v1381_v38 = vor.u32 %v1408_v35, %v1378_v36  ;;  %v1377_v41 = vor.u32 %v1409_v39, %v1376_v37  ;;  %v1406_v43 = vld [vmem:[#allocation10 + $0x24] sm:$0xf] }
 0x43b   : > { %v873_v47 = vmul.f32 0.2, %v871_v45  ;;  %v874_v48 = vmul.f32 0.2, %v872_v1  ;;  %v808_v49 = vmul.f32 0.2, %v806_v44 }
 0x43c   : > { %v809_v51 = vmul.f32 0.2, %v807_v46  ;;  %1022 = vmatpush.bf16.msra.mxu1 %v1381_v38  ;;  %1008 = vmatpush.bf16.msra.mxu0 %v1377_v41 }
 0x43d   : > { %v875_v50 = vmax.f32 %v871_v45, %v873_v47  ;;  %v876_v52 = vmax.f32 %v872_v1, %v874_v48  ;;  %v810_v56 = vmax.f32 %v806_v44, %v808_v49  ;;  %v1370_v44 = vld [vmem:[#allocation10 + $0x28] sm:$0xf0]  ;;  %v1368_v45 = vld [vmem:[#allocation10 + $0x20] sm:$0xf]  ;;  %v1404_v49 = vld [vmem:[#allocation10 + $0x14] sm:$0xf] }
 0x43e   : > { %v811_v58 = vmax.f32 %v807_v46, %v809_v51  ;;  %v1373_v1 = vor.u32 %v1406_v43, %v1370_v44  ;;  %v1407_v46 = vld [vmem:[#allocation10 + $0x24] sm:$0xf0]  ;;  %v1360_v51 = vld [vmem:[#allocation10 + $0x10] sm:$0xf] }
 0x43f   : > { %v877_v53 = vadd.f32 %v875_v50, %v2036_v40  ;;  %v878_v54 = vadd.f32 %v876_v52, %v2038_v42  ;;  %v812_v59 = vadd.f32 %v810_v56, %v2036_v40  ;;  %v1369_v47 = vor.u32 %v1407_v46, %v1368_v45  ;;  %v1362_v50 = vld [vmem:[#allocation10 + $0x18] sm:$0xf0]  ;;  %v1354_v56 = vld [vmem:[#allocation10 + $0x8] sm:$0xf0] }
 0x440   : > { %v813_v60 = vadd.f32 %v811_v58, %v2038_v42  ;;  %1023 = vmatpush.bf16.msra.mxu1 %v1373_v1  ;;  %v1365_v52 = vor.u32 %v1404_v49, %v1362_v50 }
 0x441   : > { %v879_v55 = vsel %vm428_vm0, %v877_v53, -inf  ;;  %v882_v57 = vsel %vm428_vm0, %v878_v54, -inf  ;;  %v814_v61 = vsel %vm428_vm0, %v812_v59, -inf  ;;  %1009 = vmatpush.bf16.msra.mxu0 %v1369_v47 }
 0x442   : > { %880 = vmax.xlane.f32.xlu1 %v879_v55  ;;  %883 = vmax.xlane.f32.xlu0 %v882_v57  ;;  %v817_v62 = vsel %vm428_vm0, %v813_v60, -inf  ;;  %v1402_v55 = vld [vmem:[#allocation10 + $0x4] sm:$0xf]  ;;  %v1352_v57 = vld [vmem:[#allocation10] sm:$0xf] }
 0x443   : > { %v1357_v58 = vor.u32 %v1402_v55, %v1354_v56 }
 0x444   : > { %1024 = vmatpush.bf16.msra.mxu1 %v1365_v52 }
 0x448   : > { %1025 = vmatpush.bf16.msra.mxu1 %v1357_v58 }
 0x44a   : > { %815 = vmax.xlane.f32.xlu1 %v814_v61  ;;  %818 = vmax.xlane.f32.xlu0 %v817_v62 }
 0x468   : > { %v899_v63 = vpop.permute.xlu2 %898 }
 0x469   : > { %911 = vmatpush.bf16.msrb.mxu3 %v899_v63 }
 0x4b5   : > { %v881_v0 = vpop.xlane.xlu1 %880  ;;  %v884_v2 = vpop.xlane.xlu0 %883 }
 0x4b6   : > { %v885_v3 = vsub.f32 %v877_v53, %v881_v0  ;;  %v886_v4 = vsub.f32 %v878_v54, %v884_v2  ;;  %v1405_v53 = vld [vmem:[#allocation10 + $0x14] sm:$0xf0]  ;;  %v1808_v2 = vmov 1  }
 0x4b7   : > { %v1361_v54 = vor.u32 %v1405_v53, %v1360_v51  ;;  %1513 = vset.pattern.permute.xlu0 %v1808_v2  ;;  %1514 = vset.pattern.permute.xlu1 %v1808_v2 }
 0x4b8   : > { %v887_v5 = vmul.f32 1.442695, %v885_v3  ;;  %v889_v6 = vmul.f32 1.442695, %v886_v4  ;;  %v1516_v3 = vld [vmem:[%s2156_s5] ss:$0 sm:$0xff] }
 0x4b9   : > { %1010 = vmatpush.bf16.msra.mxu0 %v1361_v54 }
 0x4ba   : > { %1538 = vpow2.f32 %v887_v5 }
 0x4bb   : > { %1540 = vpow2.f32 %v889_v6 }
 0x4bd   : > { %v816_v7 = vpop.xlane.xlu1 %815  ;;  %v819_v8 = vpop.xlane.xlu0 %818 }
 0x4be   : > { %v820_v9 = vsub.f32 %v812_v59, %v816_v7  ;;  %v821_v10 = vsub.f32 %v813_v60, %v819_v8  ;;  %v1403_v59 = vld [vmem:[#allocation10 + $0x4] sm:$0xf0] }
 0x4bf   : > { %v1353_v60 = vor.u32 %v1403_v59, %v1352_v57 }
 0x4c0   : > { %v1539_v11 = vpop.eup %1538  ;;  %v822_v12 = vmul.f32 1.442695, %v820_v9  ;;  %v824_v14 = vmul.f32 1.442695, %v821_v10 }
 0x4c1   : > { %v1541_v13 = vpop.eup %1540  ;;  %v891_v15 = vsel %vm428_vm0, %v1539_v11, 0.0  ;;  %1011 = vmatpush.bf16.msra.mxu0 %v1353_v60 }
 0x4c2   : > { %1542 = vpow2.f32 %v822_v12  ;;  %v894_v16 = vsel %vm428_vm0, %v1541_v13, 0.0  ;;  %892 = vadd.xlane.f32.xlu1 %v891_v15  ;;  %v897_v17 = vpack.c.bf16 %v1541_v13, %v1539_v11 }
 0x4c3   : > { %1544 = vpow2.f32 %v824_v14  ;;  %895 = vadd.xlane.f32.xlu0 %v894_v16 }
 0x4c4   : > { %1347 = vmatmul.msk.bf16.vlgmr.msrb.gmra.mxu3 %vm428_vm0, %v897_v17 }
 0x4c8   : > { %v1543_v18 = vpop.eup %1542 }
 0x4c9   : > { %v1545_v19 = vpop.eup %1544  ;;  %v826_v20 = vsel %vm428_vm0, %v1543_v18, 0.0 }
 0x4ca   : > { %v829_v21 = vsel %vm428_vm0, %v1545_v19, 0.0  ;;  %827 = vadd.xlane.f32.xlu1 %v826_v20  ;;  %v832_v23 = vpack.c.bf16 %v1545_v19, %v1543_v18 }
 0x4cb   : > { %830 = vadd.xlane.f32.xlu0 %v829_v21 }
 0x4cc   : > { %1346 = vmatmul.msk.bf16.vlgmr.msrb.gmra.mxu2 %vm428_vm0, %v832_v23 }
 0x535   : > { %v893_v24 = vpop.xlane.xlu1 %892 }
 0x536   : > { %1546 = vrcp.f32 %v893_v24  ;;  %v896_v25 = vpop.xlane.xlu0 %895 }
 0x537   : > { %1548 = vrcp.f32 %v896_v25 }
 0x53c   : > { %v1547_v26 = vpop.eup %1546 }
 0x53d   : > { %v920_v27 = vmul.f32 %v1547_v26, %v2057_v22  ;;  %v1549_v31 = vpop.eup %1548  ;;  %v828_v48 = vpop.xlane.xlu1 %827 }
 0x53e   : > { %v921_v32 = vmul.f32 %v1549_v31, %v2061_v28  ;;  %1550 = vrcp.f32 %v828_v48  ;;  %v831_v61 = vpop.xlane.xlu0 %830 }
 0x53f   : > { %1552 = vrcp.f32 %v831_v61  ;;  %v1517_v61 = vld [vmem:[%s2158_s7] ss:$0 sm:$0xff] }
 0x544   : > { %v1551_v62 = vpop.eup %1550 }
 0x545   : > { %v858_v0 = vmul.f32 %v1551_v62, %v2057_v22  ;;  %v1553_v7 = vpop.eup %1552 }
 0x546   : > { %v859_v11 = vmul.f32 %v1553_v7, %v2061_v28 }
 0x547   : > { %v913_v29 = vpop.f32.mrf.mxu3 }
 0x548   : > { %v922_v30 = vmul.f32 %v920_v27, %v913_v29 }
 0x54a   : > { %926 = vrot.lane.b32.xlu1 %v922_v30, %s1807_s6 }
 0x54f   : > { %v915_v33 = vpop.f32.mrf.mxu3  ;;  %v851_v63 = vpop.f32.mrf.mxu2 }
 0x550   : > { %v923_v34 = vmul.f32 %v921_v32, %v915_v33  ;;  %v860_v4 = vmul.f32 %v858_v0, %v851_v63 }
 0x552   : > { %928 = vrot.lane.b32.xlu0 %v923_v34, %s1807_s6 }
 0x557   : > { %v853_v9 = vpop.f32.mrf.mxu2 }
 0x558   : > { %v861_v12 = vmul.f32 %v859_v11, %v853_v9 }
 0x5bc   : > { %v927_v5 = vpop.permute.xlu1 %926 }
 0x5bd   : > { %v932_v6 = vsel %vm659_vm3, %v860_v4, %v927_v5 }
 0x5be   : > { %v937_v8 = vadd.f32 %v1516_v3, %v932_v6 }
 0x5c0   : > { %v941_v10 = vmin.f32 %v937_v8, 0.0  ;;  %vm939_vm7 = vcmp.gt.f32.partialorder %v937_v8, 0.0 }
 0x5c2   : > { %v943_v13 = vmul.f32 1.442695, %v941_v10 }
 0x5c4   : > { %v929_v14 = vpop.permute.xlu0 %928  ;;  %1554 = vpow2.f32 %v943_v13 }
 0x5c5   : > { %v933_v15 = vsel %vm659_vm3, %v861_v12, %v929_v14 }
 0x5c6   : > { %v938_v16 = vadd.f32 %v1516_v3, %v933_v15 }
 0x5c8   : > { %v942_v17 = vmin.f32 %v938_v16, 0.0  ;;  %vm940_vm8 = vcmp.gt.f32.partialorder %v938_v16, 0.0 }
 0x5ca   : > { %v945_v18 = vmul.f32 1.442695, %v942_v17  ;;  %v1555_v19 = vpop.eup %1554 }
 0x5cb   : > { %v1348_v20 = vadd.f32 -1.0, %v1555_v19 }
 0x5cc   : > { %1556 = vpow2.f32 %v945_v18 }
 0x5cd   : > { %v949_v24 = vsel %vm939_vm7, %v937_v8, %v1348_v20 }
 0x5d2   : > { %v1557_v21 = vpop.eup %1556 }
 0x5d3   : > { %v1349_v23 = vadd.f32 -1.0, %v1557_v21 }
 0x5d5   : > { %v950_v25 = vsel %vm940_vm8, %v938_v16, %v1349_v23 }
 0x5d6   : > { %v960_v26 = vpack.c.bf16 %v950_v25, %v949_v24 }
 0x5d8   : > { %1382 = vmatmul.msk.bf16.vlgmr.msra.gmra.mxu0 %vm729_vm6, %v960_v26  ;;  %1383 = vmatmul.msk.bf16.vlgmr.msra.gmra.mxu1 %vm729_vm6, %v960_v26 }
 0x655   : > { %v1013_v27 = vpop.f32.mrf.mxu0  ;;  %v1027_v29 = vpop.f32.mrf.mxu1 }
 0x656   : > { %1067 = vperm.xlu0 %1513, %v1027_v29  }
 0x65d   : > { %v1015_v30 = vpop.f32.mrf.mxu0  ;;  %v1029_v31 = vpop.f32.mrf.mxu1 }
 0x65e   : > { %v1032_v32 = vpack.c.bf16 %v1015_v30, %v1013_v27  ;;  %1072 = vperm.xlu1 %1514, %v1029_v31  }
 0x660   : > { %1113 = vmatpush.bf16.msra.mxu2 %v1032_v32 }
 0x693   : > { %1033 = vxpose.xlu1.b32.start [1/2] (short) (narrow) %v1027_v29, 8 }
 0x69b   : > { %1034 = vxpose.xlu1.b32.end [2/2] (short) (narrow) %v1029_v31, 8 }
 0x6c8   : > { %v1068_v36 = vpop.permute.xlu0 %1067 }
 0x6d0   : > { %v1073_v33 = vpop.permute.xlu1 %1072 }
 0x737   : > { %v1049_v34 = vpop.trf.xlu1 }
 0x738   : > { %v1075_v35 = vperm.slane %v1049_v34, 0 }
 0x73a   : > { %v1076_v37 = vadd.f32 %v1075_v35, %v1068_v36  ;;  %v1077_v38 = vadd.f32 %v1075_v35, %v1073_v33 }
 0x73c   : > { %v1078_v39 = vmul.f32 0.2, %v1076_v37  ;;  %v1079_v41 = vmul.f32 0.2, %v1077_v38 }
 0x73e   : > { %v1080_v43 = vmax.f32 %v1076_v37, %v1078_v39  ;;  %v1081_v44 = vmax.f32 %v1077_v38, %v1079_v41 }
 0x740   : > { %v1083_v45 = vadd.f32 %v1081_v44, %v2038_v42  ;;  %v1082_v1 = vadd.f32 %v1080_v43, %v2036_v40 }
 0x742   : > { %v1087_v46 = vsel %vm428_vm0, %v1083_v45, -inf  ;;  %v1084_v47 = vsel %vm428_vm0, %v1082_v1, -inf }
 0x743   : > { %1088 = vmax.xlane.f32.xlu2 %v1087_v46  ;;  %1085 = vmax.xlane.f32.xlu0 %v1084_v47 }
 0x7b6   : > { %v1089_v48 = vpop.xlane.xlu2 %1088  ;;  %v1086_v49 = vpop.xlane.xlu0 %1085 }
 0x7b7   : > { %v1091_v50 = vsub.f32 %v1083_v45, %v1089_v48  ;;  %v1090_v51 = vsub.f32 %v1082_v1, %v1086_v49 }
 0x7b9   : > { %v1094_v52 = vmul.f32 1.442695, %v1091_v50  ;;  %v1092_v53 = vmul.f32 1.442695, %v1090_v51 }
 0x7bb   : > { %1558 = vpow2.f32 %v1094_v52 }
 0x7bc   : > { %1560 = vpow2.f32 %v1092_v53 }
 0x7c1   : > { %v1559_v54 = vpop.eup %1558 }
 0x7c2   : > { %v1561_v55 = vpop.eup %1560  ;;  %v1099_v56 = vsel %vm428_vm0, %v1559_v54, 0.0 }
 0x7c3   : > { %v1102_v42 = vpack.c.bf16 %v1559_v54, %v1561_v55  ;;  %v1096_v40 = vsel %vm428_vm0, %v1561_v55, 0.0 }
 0x7c4   : > { %1097 = vadd.xlane.f32.xlu0 %v1096_v40 }
 0x7c5   : > { %1384 = vmatmul.msk.bf16.vlgmr.msra.gmra.mxu2 %vm428_vm0, %v1102_v42 }
 0x7cc   : > { %1100 = vadd.xlane.f32.xlu0 %v1099_v56 }
 0x837   : > { %v1098_v57 = vpop.xlane.xlu0 %1097 }
 0x838   : > { %1562 = vrcp.f32 %v1098_v57 }
 0x83e   : > { %v1563_v59 = vpop.eup %1562 }
 0x83f   : > { %v1101_v58 = vpop.xlane.xlu0 %1100  ;;  %v1122_v60 = vmul.f32 %v1563_v59, %v2057_v22 }
 0x840   : > { %1564 = vrcp.f32 %v1101_v58 }
 0x846   : > { %v1565_v2 = vpop.eup %1564 }
 0x847   : > { %v1123_v22 = vmul.f32 %v1565_v2, %v2061_v28 }
 0x848   : > { %v1115_v62 = vpop.f32.mrf.mxu2 }
 0x849   : > { %v1124_v63 = vmul.f32 %v1122_v60, %v1115_v62 }
 0x84b   : > { %v1129_v0 = vadd.f32 %v1517_v61, %v1124_v63 }
 0x84d   : > { %v1131_v3 = vsel %vm659_vm3, %v1129_v0, 0.0 }
 0x84e   : > { %1133 = vst [vmem:[%s416_s20] sm:$0xff] %v1131_v3 }
 0x850   : > { %v1117_v4 = vpop.f32.mrf.mxu2 }
 0x851   : > { %v1125_v5 = vmul.f32 %v1123_v22, %v1117_v4 }
 0x853   : > { %v1130_v6 = vadd.f32 %v1517_v61, %v1125_v5 }
 0x855   : > { %v1132_v7 = vsel %vm659_vm3, %v1130_v6, 0.0 }
 0x856   : > { %1134 = vst [vmem:[%s416_s20 + $0x8] sm:$0xff] %v1132_v7 }
 0x857   : > { %1743 = shalt.err (!%p1740_p10)
}
 0x858   : > { %s1809_s24 = smov 128   ;;  %s1810_s13 = smov 8  }
 0x859   : > { %1431 = dma.vmem_to_hbm [thread:$0]  (%p1947_p5), %s1149_s10, 256, %s1151_s16, %s1136_s9, %s1809_s24, %s1809_s24, %s1810_s13  }
 0x85a PF: > { %p1461_p11 = scmp.ge.s32.totalorder %s1794_s30, 2  ;;  %s1165_s4 = sand.u32 1, %s1782_s27  }
 0x85b   : > { %s1166_s17 = scalar_lea.sflag [#allocation4], %s1165_s4 }
 0x85c   : > { %p1451_p12 = pnand %p1461_p11, %p1891_p6 }
 0x85e   : > { %p1452_p13 = pneg %p1451_p12 }
 0x860   : > { %1777 = dma.done.wait (%p1452_p13), %s1166_s17, 256  }
 0x861   : > { %1779 = vsyncadd (%p1452_p13), %s1166_s17, 4294967040  ;;  %s2185_s30 = sld [smem:[#allocation19_spill]]  ;;  %s2188_s27 = smov %s1786_s28 }
 0x862   : > { %s2186_s2 = sld [smem:[#allocation17_spill]] }
 0x863   : > { %s2187_s29 = sld [smem:[#allocation20_spill]] }
 0x867   : > { %p25_p0 = scmp.ge.s32.totalorder %s2185_s30, 10  }
 0x868   : > { %s2189_s28 = smov %s2186_s2 }
 0x869   :  { %27 = sbr.rel (!%p25_p0) target bundleno = 12 (0xc), region = 122 }
 0x86e   :  { %1172 = vsyncpa [#allocation3], 1 }
 0x86f   :  { %1174 = vsyncpa [#allocation3 + $0x1], 1 }
 0x870   :  { %1175 = vsyncpa [#allocation6], 1 }
 0x871   :  { %1177 = vsyncpa [#allocation6 + $0x1], 1 }
 0x872   :  { %1178 = vsyncpa [#allocation9], 1 }
 0x873   :  { %1179 = vsyncpa [#allocation4], 1 }
 0x874   :  { %1181 = vsyncpa [#allocation4 + $0x1], 1 }

</bundles_post_ra>
